<compile_context>
chip_gen: v6e
topology: v6e:2x2x1
jax: 0.10.0
libtpu: 0.0.40
codegen_flags: <defaults>
</compile_context>

<pallas_src>
import functools

import numpy as np
import jax
import jax.numpy as jnp
from jax.experimental import pallas as pl
from jax.experimental.pallas import tpu as pltpu

MIN_IMG = 16                      # minimum_image_size in the PyTorch module
_BN_EPS = 1e-5
_VMEM_LIMIT = 48 * 1024 * 1024    # explicit scoped-VMEM budget (< v7x 64 MiB)


def _round_up(x, m):
    return (x + m - 1) // m * m


def _pick_row_tile(m, cap=1024):
    for t in (1024, 512, 256, 128, 64, 32, 16, 8):
        if t <= cap and m % t == 0:
            return t
    return m


# --------------------------------------------------------------------------
# Pallas kernels: tiled matmul (+bias+activation) with f32 accumulator
# --------------------------------------------------------------------------

def _apply_act(acc, act):
    if act == "relu":
        return jnp.maximum(acc, 0.0)
    if act == "tanh":
        return jnp.tanh(acc)
    return acc


def _matmul_bias_kernel(x_ref, w_ref, b_ref, o_ref, acc_ref, *, act):
    k = pl.program_id(2)

    @pl.when(k == 0)
    def _():
        acc_ref[...] = jnp.zeros_like(acc_ref)

    acc_ref[...] += jnp.dot(x_ref[...], w_ref[...],
                            preferred_element_type=jnp.float32)

    @pl.when(k == pl.num_programs(2) - 1)
    def _():
        acc = acc_ref[...] + b_ref[...]
        o_ref[...] = _apply_act(acc, act).astype(o_ref.dtype)


def _matmul_kernel(x_ref, w_ref, o_ref, acc_ref, *, act):
    k = pl.program_id(2)

    @pl.when(k == 0)
    def _():
        acc_ref[...] = jnp.zeros_like(acc_ref)

    acc_ref[...] += jnp.dot(x_ref[...], w_ref[...],
                            preferred_element_type=jnp.float32)

    @pl.when(k == pl.num_programs(2) - 1)
    def _():
        o_ref[...] = _apply_act(acc_ref[...], act).astype(o_ref.dtype)


def matmul_bias_act(x, w, b=None, act="none", out_dtype=jnp.float32,
                    tm_target=512, tn_target=512, tk_target=1024):
    """out = act(x @ w (+ b)); bf16 operands, f32 MXU accumulation.

    M padded to the row tile, N zero-padded to a multiple of 128 (lane-dense
    stores), K optionally split onto a reduction grid axis with a VMEM f32
    accumulator.  Padding is sliced off before return.
    """
    M, K = x.shape
    K2, N = w.shape
    assert K == K2

    x = x.astype(jnp.bfloat16)
    w = w.astype(jnp.bfloat16)

    # rows (M): parallel axis
    tm = min(tm_target, _round_up(M, 8))
    Mp = _round_up(M, tm)
    if Mp != M:
        x = jnp.pad(x, ((0, Mp - M), (0, 0)))

    # cols (N): parallel axis, lane-dense
    Np = _round_up(N, 128)
    if Np != N:
        w = jnp.pad(w, ((0, 0), (0, Np - N)))
    tn = min(tn_target, Np)
    while Np % tn:
        tn //= 2

    # contraction (K): reduction axis, tiled only when large & divisible
    tk = K
    for cand in (tk_target, tk_target // 2):
        if K > cand and K % cand == 0:
            tk = cand
            break
    nk = K // tk

    grid = (Mp // tm, Np // tn, nk)

    operands = [x, w]
    in_specs = [
        pl.BlockSpec((tm, tk), lambda i, j, k: (i, k)),
        pl.BlockSpec((tk, tn), lambda i, j, k: (k, j)),
    ]
    if b is not None:
        bp = b.astype(jnp.float32)
        if Np != N:
            bp = jnp.pad(bp, (0, Np - N))
        operands.append(bp.reshape(1, Np))
        in_specs.append(pl.BlockSpec((1, tn), lambda i, j, k: (0, j)))
        kern = functools.partial(_matmul_bias_kernel, act=act)
    else:
        kern = functools.partial(_matmul_kernel, act=act)

    out = pl.pallas_call(
        kern,
        out_shape=jax.ShapeDtypeStruct((Mp, Np), out_dtype),
        grid_spec=pltpu.PrefetchScalarGridSpec(
            num_scalar_prefetch=0,
            grid=grid,
            in_specs=in_specs,
            out_specs=pl.BlockSpec((tm, tn), lambda i, j, k: (i, j)),
            scratch_shapes=[pltpu.VMEM((tm, tn), jnp.float32)],
        ),
        compiler_params=pltpu.CompilerParams(
            dimension_semantics=("parallel", "parallel", "arbitrary"),
            vmem_limit_bytes=_VMEM_LIMIT),
    )(*operands)

    if (Mp, Np) != (M, N):
        out = out[:M, :N]
    return out


# --------------------------------------------------------------------------
# Pallas kernels: tiled two-pass training-mode BatchNorm + ReLU
# --------------------------------------------------------------------------

def _bn_stats_kernel(x_ref, sum_ref, ssq_ref):
    @pl.when(pl.program_id(0) == 0)
    def _():
        sum_ref[...] = jnp.zeros_like(sum_ref)
        ssq_ref[...] = jnp.zeros_like(ssq_ref)

    x = x_ref[...].astype(jnp.float32)
    sum_ref[...] += jnp.sum(x, axis=0, keepdims=True)
    ssq_ref[...] += jnp.sum(x * x, axis=0, keepdims=True)


def _bn_apply_relu_kernel(x_ref, scale_ref, shift_ref, o_ref):
    y = x_ref[...] * scale_ref[...] + shift_ref[...]
    o_ref[...] = jnp.maximum(y, 0.0).astype(o_ref.dtype)


def batchnorm_relu(x, gamma, beta, out_dtype=jnp.bfloat16):
    """x: (M, C), rows = (n, y, x) positions.  Batch stats, biased variance."""
    M, C = x.shape
    tm = _pick_row_tile(M)
    nm = M // tm

    sums, ssq = pl.pallas_call(
        _bn_stats_kernel,
        out_shape=(jax.ShapeDtypeStruct((1, C), jnp.float32),
                   jax.ShapeDtypeStruct((1, C), jnp.float32)),
        grid_spec=pltpu.PrefetchScalarGridSpec(
            num_scalar_prefetch=0,
            grid=(nm,),
            in_specs=[pl.BlockSpec((tm, C), lambda i: (i, 0))],
            out_specs=(pl.BlockSpec((1, C), lambda i: (0, 0)),
                       pl.BlockSpec((1, C), lambda i: (0, 0))),
        ),
        compiler_params=pltpu.CompilerParams(
            dimension_semantics=("arbitrary",),
            vmem_limit_bytes=_VMEM_LIMIT),
    )(x)

    mean = sums / M
    var = ssq / M - mean * mean                  # biased (PyTorch training norm)
    inv = jax.lax.rsqrt(var + _BN_EPS)
    scale = gamma.reshape(1, C).astype(jnp.float32) * inv
    shift = beta.reshape(1, C).astype(jnp.float32) - mean * scale

    return pl.pallas_call(
        _bn_apply_relu_kernel,
        out_shape=jax.ShapeDtypeStruct((M, C), out_dtype),
        grid_spec=pltpu.PrefetchScalarGridSpec(
            num_scalar_prefetch=0,
            grid=(nm,),
            in_specs=[pl.BlockSpec((tm, C), lambda i: (i, 0)),
                      pl.BlockSpec((1, C), lambda i: (0, 0)),
                      pl.BlockSpec((1, C), lambda i: (0, 0))],
            out_specs=pl.BlockSpec((tm, C), lambda i: (i, 0)),
        ),
        compiler_params=pltpu.CompilerParams(
            dimension_semantics=("parallel",),
            vmem_limit_bytes=_VMEM_LIMIT),
    )(x, scale, shift)


# --------------------------------------------------------------------------
# JAX glue: padding / patch extraction / phase assembly (data movement only)
# --------------------------------------------------------------------------

def _extract_patches(x, k):
    # x: (N, Hp, Wp, C) already padded -> (N, Ho, Wo, k, k, C)
    N, Hp, Wp, C = x.shape
    Ho, Wo = Hp - k + 1, Wp - k + 1
    rows = []
    for dy in range(k):
        cols = [x[:, dy:dy + Ho, dx:dx + Wo, :] for dx in range(k)]
        rows.append(jnp.stack(cols, axis=3))       # (N, Ho, Wo, k, C)
    return jnp.stack(rows, axis=3)                  # (N, Ho, Wo, k, k, C)


def conv_transpose_4x4_s2(x, w):
    """ConvTranspose2d(k=4, s=2, p=1), NHWC in/out, bias omitted (the following
    training-mode BatchNorm subtracts it exactly).

    4-sub-pixel phase decomposition:
      out[n, 2*qy+py, 2*qx+px, co]
        = sum_{dy,dx,ci} pat[n, qy+py, qx+px, dy, dx, ci]
                          * w[ci, co, 3-2*dy-py, 3-2*dx-px]
    where pat are 2x2 patches of the 1-padded, UN-dilated input: one matmul
    with K = 4*Cin and N = 4*Cout replaces the dilated 4x4 im2col.
    """
    N, H, W, Cin = x.shape
    Cout = w.shape[1]

    xpad = jnp.pad(x, ((0, 0), (1, 1), (1, 1), (0, 0)))
    pat = _extract_patches(xpad, 2)                          # (N,H+1,W+1,2,2,Cin)
    pmat = pat.reshape(N * (H + 1) * (W + 1), 4 * Cin)

    # W_all[(dy,dx,ci),(py,px,co)] = w[ci, co, 3-2*dy-py, 3-2*dx-px]
    w6 = jnp.flip(w, axis=(2, 3)).reshape(Cin, Cout, 2, 2, 2, 2)
    w_all = w6.transpose(2, 4, 0, 3, 5, 1).reshape(4 * Cin, 4 * Cout)

    ymat = matmul_bias_act(pmat, w_all, b=None, act="none",
                           out_dtype=jnp.float32)            # (N*(H+1)*(W+1), 4*Cout)
    y6 = ymat.reshape(N, H + 1, W + 1, 2, 2, Cout)

    # out[n, 2*qy+py, 2*qx+px, :] = y6[n, qy+py, qx+px, py, px, :]
    ph = [[y6[:, py:py + H, px:px + W, py, px, :] for px in (0, 1)]
          for py in (0, 1)]
    z = jnp.stack([jnp.stack(ph[0], axis=3),
                   jnp.stack(ph[1], axis=3)], axis=2)        # (N,H,2,W,2,Cout)
    return z.reshape(N, 2 * H, 2 * W, Cout)


def conv3x3_bias_tanh(x, w, b):
    """Conv2d(k=3, s=1, p=1) + bias + tanh; NHWC in/out.

    The matmul wrapper zero-pads nc -> 128 output lanes (lane-dense store) and
    slices the padding off again.
    """
    N, H, W, Cin = x.shape
    nc = w.shape[0]
    xpad = jnp.pad(x, ((0, 0), (1, 1), (1, 1), (0, 0)))
    pat = _extract_patches(xpad, 3)                          # (N,H,W,3,3,Cin)
    pmat = pat.reshape(N * H * W, 9 * Cin)
    wmat = w.transpose(2, 3, 1, 0).reshape(9 * Cin, nc)
    y = matmul_bias_act(pmat, wmat, b, act="tanh", out_dtype=jnp.float32)
    return y.reshape(N, H, W, nc)


# --------------------------------------------------------------------------
# Generator: parameters + forward
# --------------------------------------------------------------------------

def init_generator_params(key, img_size, latent_size, nf, nc, max_nf=512):
    num_layers = int(np.log2(img_size / MIN_IMG))
    nf_init = min(max_nf, nf * int(2 ** num_layers))
    params = {"nf_init": nf_init, "num_layers": num_layers}

    key, k_fw, k_fb = jax.random.split(key, 3)
    fc_out = MIN_IMG ** 2 * nf_init
    params["fc_w"] = 0.05 * jax.random.normal(k_fw, (latent_size, fc_out), jnp.float32)
    params["fc_b"] = 0.05 * jax.random.normal(k_fb, (fc_out,), jnp.float32)

    stages = []
    for i in range(num_layers):
        nf_in = min(max_nf, nf * int(2 ** (num_layers - i)))
        nf_out = min(max_nf, nf * int(2 ** (num_layers - 1 - i)))
        key, kw, kb, kg, kbt = jax.random.split(key, 5)
        stages.append(dict(
            # PyTorch ConvTranspose2d weight layout: (C_in, C_out, kH, kW)
            w=0.05 * jax.random.normal(kw, (nf_in, nf_out, 4, 4), jnp.float32),
            b=0.05 * jax.random.normal(kb, (nf_out,), jnp.float32),
            gamma=1.0 + 0.1 * jax.random.normal(kg, (nf_out,), jnp.float32),
            beta=0.1 * jax.random.normal(kbt, (nf_out,), jnp.float32),
        ))
    params["stages"] = stages

    key, kw, kb = jax.random.split(key, 3)
    # PyTorch Conv2d weight layout: (C_out, C_in, kH, kW)
    params["final_w"] = 0.05 * jax.random.normal(kw, (nc, nf, 3, 3), jnp.float32)
    params["final_b"] = 0.05 * jax.random.normal(kb, (nc,), jnp.float32)
    return params


def generator_forward(params, z, nc):
    B = z.shape[0]
    nf_init = params["nf_init"]

    # fc: Linear + ReLU (bf16 output feeds the first conv-transpose)
    m = matmul_bias_act(z, params["fc_w"], params["fc_b"], act="relu",
                        out_dtype=jnp.bfloat16)              # (B, 256*nf_init)

    # view(B, nf_init, 16, 16) [NCHW] -> internal NHWC
    x = m.reshape(B, nf_init, MIN_IMG, MIN_IMG).transpose(0, 2, 3, 1)

    # repeat stages: ConvTranspose2d(4,2,1) + BatchNorm2d + ReLU
    for st in params["stages"]:
        y = conv_transpose_4x4_s2(x, st["w"])    # bias skipped: cancelled by BN
        N, Ho, Wo, Cout = y.shape
        y = batchnorm_relu(y.reshape(N * Ho * Wo, Cout), st["gamma"], st["beta"])
        x = y.reshape(N, Ho, Wo, Cout)

    # final: Conv2d(nf, nc, 3, 1, 1) + Tanh
    y = conv3x3_bias_tanh(x, params["final_w"], params["final_b"])
    return y.transpose(0, 3, 1, 2)               # -> NCHW


# --------------------------------------------------------------------------
# Numpy reference (direct PyTorch semantics, NCHW) with bf16-rounded matmul
# operands so that tolerances stay tight against the bf16/f32 MXU pipeline.
# --------------------------------------------------------------------------

def _bf16_round(a):
    a32 = np.asarray(a, np.float32)
    return np.asarray(jnp.asarray(a32, jnp.bfloat16).astype(jnp.float32)).astype(np.float64)


def reference_forward_np(params, z, nc):
    p = jax.tree_util.tree_map(np.asarray, params)
    B = z.shape[0]
    nf_init = int(p["nf_init"])

    m = np.maximum(_bf16_round(z) @ _bf16_round(p["fc_w"])
                   + p["fc_b"].astype(np.float64), 0.0)
    x = m.reshape(B, nf_init, MIN_IMG, MIN_IMG)              # NCHW

    for st in p["stages"]:
        wt = _bf16_round(st["w"])
        bt = st["b"].astype(np.float64)
        xb = _bf16_round(x)
        N, Cin, H, W = x.shape
        Cout = wt.shape[1]
        Ho, Wo = 2 * H, 2 * W
        out = np.zeros((N, Cout, Ho, Wo), np.float64)
        for iy in range(H):
            for ix in range(W):
                for ky in range(4):
                    oy = 2 * iy + ky - 1
                    if not (0 <= oy < Ho):
                        continue
                    for kx in range(4):
                        ox = 2 * ix + kx - 1
                        if not (0 <= ox < Wo):
                            continue
                        out[:, :, oy, ox] += xb[:, :, iy, ix] @ wt[:, :, ky, kx]
        out += bt[None, :, None, None]
        mean = out.mean(axis=(0, 2, 3), keepdims=True)
        var = out.var(axis=(0, 2, 3), keepdims=True)
        out = (out - mean) / np.sqrt(var + _BN_EPS)
        out = out * st["gamma"][None, :, None, None] + st["beta"][None, :, None, None]
        x = np.maximum(out, 0.0)

    wf = _bf16_round(p["final_w"])
    bf = p["final_b"].astype(np.float64)
    xb = _bf16_round(x)
    N, Cin, H, W = x.shape
    xp = np.pad(xb, ((0, 0), (0, 0), (1, 1), (1, 1)))
    out = np.zeros((N, nc, H, W), np.float64)
    for ky in range(3):
        for kx in range(3):
            out += np.einsum("ncyx,oc->noyx",
                             xp[:, :, ky:ky + H, kx:kx + W], wf[:, :, ky, kx])
    out += bf[None, :, None, None]
    return np.tanh(out)


# --------------------------------------------------------------------------

if __name__ == "__main__":
    # Small-but-faithful config: img_size=32 -> one repeat stage.
    B, IMG, LATENT, NF, NC = 2, 32, 32, 8, 3

    key = jax.random.PRNGKey(0)
    key, kz = jax.random.split(key)
    params = init_generator_params(key, IMG, LATENT, NF, NC)
    z = jax.random.normal(kz, (B, LATENT), jnp.float32)

    out = generator_forward(params, z, NC)
    out = jax.block_until_ready(out)
    assert out.shape == (B, NC, IMG, IMG), out.shape

    ref = reference_forward_np(params, np.asarray(z, np.float64), NC)
    np.testing.assert_allclose(np.asarray(out, np.float64), ref,
                               rtol=1e-2, atol=1e-2)

    print("KERNEL_OK")
</pallas_src>

<mosaic_0001>
module attributes {stable_mosaic.version = 11 : i64} {
  func.func @_matmul_bias_kernel(%arg0: i32, %arg1: i32, %arg2: i32, %arg3: memref<8x32xbf16, #tpu.memory_space<vmem>>, %arg4: memref<32x512xbf16, #tpu.memory_space<vmem>>, %arg5: memref<1x512xf32, #tpu.memory_space<vmem>>, %arg6: memref<8x512xbf16, #tpu.memory_space<vmem>>, %arg7: memref<8x512xf32, #tpu.memory_space<vmem>>) attributes {dimension_semantics = [#tpu.dimension_semantics<parallel>, #tpu.dimension_semantics<parallel>, #tpu.dimension_semantics<arbitrary>], iteration_bounds = array<i64: 1, 8, 1>, scalar_prefetch = 0 : i64, scratch_operands = 1 : i64, tpu.core_type = #tpu.core_type<tc>, window_params = [{transform_indices = @transform_0, window_bounds = array<i64: 8, 32>}, {transform_indices = @transform_1, window_bounds = array<i64: 32, 512>}, {transform_indices = @transform_2, window_bounds = array<i64: 1, 512>}, {transform_indices = @transform_3, window_bounds = array<i64: 8, 512>}]} {
    %c0_i32 = arith.constant 0 : i32
    %0 = arith.cmpi eq, %arg2, %c0_i32 : i32
    %1 = arith.extui %0 : i1 to i32
    %c0_i32_0 = arith.constant 0 : i32
    %2 = arith.cmpi ne, %1, %c0_i32_0 : i32
    scf.if %2 {
      %cst_10 = arith.constant 0.000000e+00 : f32
      %12 = vector.broadcast %cst_10 : f32 to vector<8x512xf32>
      %c0_11 = arith.constant 0 : index
      %c0_12 = arith.constant 0 : index
      %13 = vector.load %arg7[%c0_11, %c0_12] : memref<8x512xf32, #tpu.memory_space<vmem>>, vector<8x512xf32>
      tpu.vector_store %arg7[%c0_11, %c0_12], %12 {strides = array<i32>} : memref<8x512xf32, #tpu.memory_space<vmem>>, vector<8x512xf32>,
    } else {
    }
    %c0 = arith.constant 0 : index
    %c0_1 = arith.constant 0 : index
    %3 = vector.load %arg7[%c0, %c0_1] : memref<8x512xf32, #tpu.memory_space<vmem>>, vector<8x512xf32>
    %c0_2 = arith.constant 0 : index
    %c0_3 = arith.constant 0 : index
    %4 = vector.load %arg3[%c0_2, %c0_3] : memref<8x32xbf16, #tpu.memory_space<vmem>>, vector<8x32xbf16>
    %c0_4 = arith.constant 0 : index
    %c0_5 = arith.constant 0 : index
    %5 = vector.load %arg4[%c0_4, %c0_5] : memref<32x512xbf16, #tpu.memory_space<vmem>>, vector<32x512xbf16>
    %cst = arith.constant dense<0.000000e+00> : vector<8x512xf32>
    %6 = tpu.matmul %4, %5, %cst {dimension_numbers = #tpu.dot_dimension_numbers<[1], [0], [0], [1], [0, 0, 1, 1], [], []>} : vector<8x32xbf16>, vector<32x512xbf16>, vector<8x512xf32> -> vector<8x512xf32>
    %7 = arith.addf %3, %6 : vector<8x512xf32>
    %c0_6 = arith.constant 0 : index
    %c0_7 = arith.constant 0 : index
    %8 = vector.load %arg7[%c0_6, %c0_7] : memref<8x512xf32, #tpu.memory_space<vmem>>, vector<8x512xf32>
    tpu.vector_store %arg7[%c0_6, %c0_7], %7 {strides = array<i32>} : memref<8x512xf32, #tpu.memory_space<vmem>>, vector<8x512xf32>,
    %c0_i32_8 = arith.constant 0 : i32
    %9 = arith.cmpi eq, %arg2, %c0_i32_8 : i32
    %10 = arith.extui %9 : i1 to i32
    %c0_i32_9 = arith.constant 0 : i32
    %11 = arith.cmpi ne, %10, %c0_i32_9 : i32
    scf.if %11 {
      %c0_10 = arith.constant 0 : index
      %c0_11 = arith.constant 0 : index
      %12 = vector.load %arg7[%c0_10, %c0_11] : memref<8x512xf32, #tpu.memory_space<vmem>>, vector<8x512xf32>
      %c0_12 = arith.constant 0 : index
      %c0_13 = arith.constant 0 : index
      %13 = vector.load %arg5[%c0_12, %c0_13] : memref<1x512xf32, #tpu.memory_space<vmem>>, vector<1x512xf32>
      %14 = vector.broadcast %13 : vector<1x512xf32> to vector<8x512xf32>
      %15 = arith.addf %12, %14 : vector<8x512xf32>
      %cst_14 = arith.constant 0.000000e+00 : f32
      %16 = vector.broadcast %cst_14 : f32 to vector<8x512xf32>
      %17 = arith.maximumf %15, %16 : vector<8x512xf32>
      %18 = arith.truncf %17 : vector<8x512xf32> to vector<8x512xbf16>
      %c0_15 = arith.constant 0 : index
      %c0_16 = arith.constant 0 : index
      %19 = vector.load %arg6[%c0_15, %c0_16] : memref<8x512xbf16, #tpu.memory_space<vmem>>, vector<8x512xbf16>
      tpu.vector_store %arg6[%c0_15, %c0_16], %18 {strides = array<i32>} : memref<8x512xbf16, #tpu.memory_space<vmem>>, vector<8x512xbf16>,
    } else {
    }
    return
  }
  func.func @transform_0(%arg0: i32, %arg1: i32, %arg2: i32) -> (i32, i32) {
    %c0_i32 = arith.constant 0 : i32
    return %arg0, %arg2 : i32, i32
  }
  func.func @transform_1(%arg0: i32, %arg1: i32, %arg2: i32) -> (i32, i32) {
    %c0_i32 = arith.constant 0 : i32
    return %arg2, %arg1 : i32, i32
  }
  func.func @transform_2(%arg0: i32, %arg1: i32, %arg2: i32) -> (i32, i32) {
    %c0_i32 = arith.constant 0 : i32
    %c0_i32_0 = arith.constant 0 : i32
    return %c0_i32, %arg1 : i32, i32
  }
  func.func @transform_3(%arg0: i32, %arg1: i32, %arg2: i32) -> (i32, i32) {
    %c0_i32 = arith.constant 0 : i32
    return %arg0, %arg1 : i32, i32
  }
}

</mosaic_0001>

<bundles_post_ra>
// kernel: tpu_custom_call.1
= control target key start
LH: loop header
LB: loop body
LE: loop exit
PB: predicated region body
PF: predicated region fallthrough
CT: control target
= control target key end

     0   :  { %s1150_s0 = inlined_call_operand.hbm [shape: bf16[8,32], index: 0, kind: input, shape index: {}]   ;;  %s1151_s1 = inlined_call_operand.hbm [shape: bf16[32,4096], index: 1, kind: input, shape index: {}]   ;;  %s1152_s2 = inlined_call_operand.hbm [shape: f32[1,4096], index: 2, kind: input, shape index: {}]   ;;  %s1153_s3 = inlined_call_operand.hbm [shape: bf16[8,4096], index: 3, kind: output, shape index: {}]  }
   0x1   :  { %1157 = sst [smem:[#allocation13_spill]] %s1151_s1 }
   0x2   :  { %8 = vsyncpa [#allocation4], 0 }
   0x3   :  { %9 = vsyncpa [#allocation7], 0 }
   0x4   :  { %11 = vsyncpa [#allocation7 + $0x1], 0 }
   0x5   :  { %12 = vsyncpa [#allocation5], 0 }
   0x6   :  { %14 = vsyncpa [#allocation5 + $0x1], 0  ;;  %s955_s12 = smov 0   ;;  %s957_s13 = smov 0  }
   0x7   :  { %s959_s14 = smov 0   ;;  %s961_s15 = smov 0  }
   0x8   :  { %s963_s16 = smov 0   ;;  %s965_s17 = smov 0  }
   0x9 LB: > { %s35_s18 = sadd.s32 1, %s921_s16  ;;  %s76_s19 = sadd.s32 1, %s913_s14  ;;  %s925_s17 = sphi %s965_s17, %s20_s17   ;;  %s921_s16 = sphi %s963_s16, %s1174_s16   ;;  %s917_s15 = sphi %s961_s15, %s1173_s15   ;;  %s913_s14 = sphi %s959_s14, %s1172_s14   ;;  %s909_s13 = sphi %s957_s13, %s1171_s13   ;;  %s905_s12 = sphi %s955_s12, %s1170_s12  }
   0xa   : > { %p37_p0 = scmp.ge.s32.totalorder %s35_s18, 8  ;;  %p83_p1 = scmp.ne.s32.totalorder %s913_s14, %s909_s13 }
   0xb   : > { %p84_p2 = scmp.eq.s32.totalorder %s925_s17, 0  ;;  %p691_p4 = scmp.lt.s32.totalorder %s925_s17, 8 }
   0xc   : > { %s1176_s18 = smov (%p37_p0, %s35_s18), 0  ;;  %s181_s21 = sand.u32 1, %s925_s17  }
   0xd   : > { %p85_p3 = por %p84_p2, %p83_p1  ;;  %s72_s20 = ssub.s32 %s921_s16, %s1176_s18 }
   0xe   : > { %p74_p5 = scmp.eq.s32.totalorder %s72_s20, 0  ;;  %s183_s22 = sand.u32 1, %s913_s14  }
   0xf   : > { %s660_s23 = sshll.u32 %s921_s16, 8  ;;  %s632_s25 = sshll.u32 %s183_s22, 6 }
  0x10   : > { %s1002_s24 = scalar_select %p74_p5, %s913_s14, %s76_s19  }
  0x11   : > { %s1158_s1 = sld [smem:[#allocation13_spill]]  ;;  %p1009_p6 = pnand %p691_p4, %p85_p3 }
  0x12   : > { %s185_s30 = scalar_lea.vmem [#allocation6], %s632_s25  ;;  %s1013_s5 = scalar_lea.sflag [#allocation7], %s181_s21 }
  0x13   : > { %s195_s4 = sshll.u32 %s185_s30, 4  ;;  %p761_p7 = pneg %p1009_p6  ;;  %s196_s4 = int_to_ptr.vmem [resolvable:$true] %s195_s4 }
  0x14   : > { %s772_s6 = scalar_lea.vmem %s196_s4, 1024  ;;  %s927_s7 = smov [#allocation6]  }
  0x15   : > { %p773_p8 = scmp.ne.s32.totalorder %s196_s4, %s772_s6  ;;  %s777_s8 = sshll.u32 %s927_s7, 4  ;;  %s778_s8 = int_to_ptr.vmem [resolvable:$false] %s777_s8 }
  0x16   : > { %s779_s9 = scalar_lea.vmem %s778_s8, 2048  ;;  %p780_p11 = scmp.lt.s32.totalorder %s196_s4, %s778_s8 }
  0x17   : > { %s194_s28 = scalar_lea.hbm %s1158_s1, %s660_s23  ;;  %p775_p9 = pnand %p773_p8, %p761_p7 }
  0x18   : > { %p781_p12 = scmp.lt.s32.totalorder %s779_s9, %s772_s6 }
  0x19   : > { %p776_p10 = pneg %p775_p9 }
  0x1a   : > { %p782_p13 = por %p781_p12, %p780_p11 }
  0x1c   : > { %p783_p0 = pnand %p782_p13, %p776_p10 }
  0x1e   : > { %786 = shalt.err (!%p783_p0)
}
  0x1f   : > { %s928_s10 = smov 2048   ;;  %s929_s11 = smov 256  }
  0x20   : > { %s930_s19 = smov 16   ;;  %s1024_s20 = sadd.s32 4294967295, %s925_s17  }
  0x21   : > { %682 = dma.hbm_to_vmem [thread:$0]  (!%p1009_p6), %s194_s28, 1024, %s196_s4, %s1013_s5, %s928_s10, %s929_s11, %s930_s19  }
  0x22   : > { %s628_s21 = sadd.s32 4294967294, %s925_s17   ;;  %p89_p2 = scmp.ne.s32.totalorder %s909_s13, %s905_s12 }
  0x23   : > { %p1155_p3 = scmp.eq.s32.totalorder %s1024_s20, 0  ;;  %p141_p4 = scmp.eq.s32.totalorder %s1024_s20, 7 }
  0x24   : > { %p147_p5 = scmp.eq.s32.totalorder %s628_s21, 7  ;;  %p629_p9 = scmp.ge.s32.totalorder %s925_s17, 1 }
  0x25   : > { %p1033_p8 = por %p1155_p3, %p89_p2  ;;  %p1041_p10 = por %p141_p4, %p83_p1 }
  0x26   : > { %p1045_p11 = por %p147_p5, %p89_p2  ;;  %p154_p12 = scmp.lt.s32.totalorder %s925_s17, 9 }
  0x27   : > { %s1160_s23 = scalar_select %p1033_p8, 1, 0 }
  0x28   : > { %s1161_s25 = scalar_select %p1041_p10, 1, 0 }
  0x29   : > { %s1162_s26 = scalar_select %p1045_p11, 1, 0 }
  0x2a   : > { %s635_s27 = sshll.u32 %s183_s22, 2  ;;  %p1052_p13 = pnand %p629_p9, %p154_p12 }
  0x2b   : > { %s931_s30 = smov [#allocation3]   ;;  %s661_s6 = sshll.u32 %s921_s16, 6 }
  0x2c   : > { %s170_s4 = sshll.u32 %s931_s30, 4  ;;  %p675_p1 = pneg %p1052_p13  ;;  %s1056_s4 = int_to_ptr.vmem [resolvable:$true] %s170_s4 }
  0x2d   : > { %s215_s9 = scalar_lea.hbm %s1152_s2, %s661_s6  ;;  %s209_s10 = scalar_lea.vmem [#allocation8], %s635_s27 }
  0x2e   : > { %s217_s11 = sshll.u32 %s209_s10, 4  ;;  %p1066_p0 = pnand %p675_p1, %p1155_p3  ;;  %s218_s11 = int_to_ptr.vmem [resolvable:$true] %s217_s11 }
  0x2f   : > { %s800_s19 = scalar_lea.vmem %s218_s11, 64  ;;  %s932_s21 = smov [#allocation8]  }
  0x30   : > { %p801_p2 = scmp.ne.s32.totalorder %s218_s11, %s800_s19  ;;  %s805_s30 = sshll.u32 %s932_s21, 4  ;;  %s806_s30 = int_to_ptr.vmem [resolvable:$false] %s805_s30 }
  0x31   : > { %s807_s1 = scalar_lea.vmem %s806_s30, 128  ;;  %p808_p9 = scmp.lt.s32.totalorder %s218_s11, %s806_s30 }
  0x32   : > { %p803_p4 = pnand %p801_p2, %p761_p7  ;;  %p809_p12 = scmp.lt.s32.totalorder %s807_s1, %s800_s19 }
  0x34   : > { %p804_p5 = pneg %p803_p4  ;;  %p810_p11 = por %p809_p12, %p808_p9 }
  0x36   : > { %p811_p10 = pnand %p810_p11, %p804_p5 }
  0x38   : > { %814 = shalt.err (!%p811_p10)
}
  0x39   : > { %685 = dma.hbm_to_vmem [thread:$0]  (!%p1009_p6), %s215_s9, 64, %s218_s11, %s1013_s5  }
  0x3a   : > { %p817_p7 = pneg %p1066_p0  ;;  %s826_s27 = scalar_lea.vmem %s1056_s4, 64 }
  0x3b   : > { %p827_p1 = scmp.ne.s32.totalorder %s1056_s4, %s826_s27  ;;  %p834_p3 = scmp.lt.s32.totalorder %s1056_s4, %s1056_s4 }
  0x3c   : > { %p835_p8 = scmp.lt.s32.totalorder %s826_s27, %s826_s27 }
  0x3d   : > { %p829_p2 = pnand %p827_p1, %p817_p7 }
  0x3e   : > { %p836_p9 = por %p835_p8, %p834_p3 }
  0x3f   : > { %p830_p4 = pneg %p829_p2 }
  0x41   : > { %p837_p11 = pnand %p836_p9, %p830_p4 }
  0x43   : > { %840 = shalt.err (!%p837_p11)
}
  0x44   : > { %678 = dma.hbm_to_vmem [thread:$0]  (!%p1066_p0), %s1150_s0, 64, %s1056_s4, [#allocation4]  }
  0x45   : > { %226 = sbr.rel (%p1052_p13) target bundleno = 304 (0x130), region = 32  ;;  %p1165_p6 = scmp.eq.s32.totalorder (!%p1052_p13), %s1024_s20, 0 }
  0x4a   : > { %892 = dma.done.wait (%p1165_p6), [#allocation4], 64   ;;  %p1166_p10 = pmov %p1165_p6 }
  0x4b   : > { %s232_s5 = sand.u32 1, %s1024_s20   ;;  %s1096_s6 = sand.u32 1, %s909_s13  }
  0x4c   : > { %894 = vsyncadd (%p1166_p10), [#allocation4], 4294967232  ;;  %s640_s7 = sshll.u32 %s1096_s6, 6  ;;  %s233_s8 = scalar_lea.sflag [#allocation7], %s232_s5 }
  0x4d   : > { %s236_s9 = scalar_lea.vmem [#allocation6], %s640_s7  ;;  %p1167_p3 = scmp.ne.s32.totalorder %s1160_s23, 0 }
  0x4f   : > { %896 = dma.done.wait (%p1167_p3), %s233_s8, 1088  }
  0x50   : > { %898 = vsyncadd (%p1167_p3), %s233_s8, 4294966208  ;;  %v933_v0 = vmov 0   ;;  %v747_v1 = vld [vmem:[%s236_s9 + $0x24] ss:$16 sps:$4 sm:$0xff]   ;;  %v749_v2 = vld [vmem:[%s236_s9 + $0x2c] ss:$16 sps:$4 sm:$0xff]   ;;  %v442_v10 = vlaneseq }
  0x51   : > { %375 = vmatprep.mubr.bf16.mxu0 %v933_v0  ;;  %416 = vmatprep.mubr.bf16.mxu1 %v933_v0  ;;  %v751_v3 = vld [vmem:[%s236_s9 + $0x20] ss:$16 sps:$4 sm:$0xff]   ;;  %v752_v4 = vld [vmem:[%s236_s9 + $0x28] ss:$16 sps:$4 sm:$0xff]   ;;  %v753_v5 = vld [vmem:[%s236_s9 + $0x4] ss:$16 sps:$4 sm:$0xff]  }
  0x52   : > { %355 = vmatprep.subr.bf16.mxu0 %v747_v1  ;;  %396 = vmatprep.subr.bf16.mxu1 %v749_v2  ;;  %v755_v6 = vld [vmem:[%s236_s9 + $0xc] ss:$16 sps:$4 sm:$0xff]   ;;  %v757_v7 = vld [vmem:[%s236_s9] ss:$16 sps:$4 sm:$0xff]   ;;  %v758_v8 = vld [vmem:[%s236_s9 + $0x8] ss:$16 sps:$4 sm:$0xff]  }
  0x53   : > { %356 = vmatpush1.bf16.msra.mxu0 %v751_v3  ;;  %397 = vmatpush1.bf16.msra.mxu1 %v752_v4  ;;  %v290_v9 = vld [vmem:[#allocation3] sm:$0xf]  ;;  %vm339_vm0 = vcmask 261120   ;;  %s641_s20 = sshll.u32 %s1096_s6, 2  ;;  %v443_v11 = vshrl.u32 %v442_v10, 7  ;;  %s642_s28 = sshll.u32 %s1096_s6, 4 }
  0x54   : > { %357 = vmatprep.subr.bf16.mxu0 %v753_v5  ;;  %398 = vmatprep.subr.bf16.mxu1 %v755_v6  ;;  %s245_s23 = scalar_lea.vmem [#allocation8], %s641_s20  ;;  %s664_s4 = sshll.u32 %s917_s15, 8 }
  0x55   : > { %v444_v12 = vsub.s32 0, %v443_v11  ;;  %v452_v13 = vsub.s32 2, %v443_v11  ;;  %v440_v14 = vld [vmem:[%s245_s23] sm:$0xf]  ;;  %v448_v15 = vsub.s32 1, %v443_v11  ;;  %v456_v16 = vsub.s32 3, %v443_v11  ;;  %s1109_s21 = scalar_lea.hbm %s1153_s3, %s664_s4 }
  0x56   : > { %s272_s10 = scalar_lea.vmem [#allocation9], %s642_s28  ;;  %s489_s15 = scalar_lea.sflag [#allocation5], %s1096_s6 }
  0x57   : > { %358 = vmatpush1.bf16.msra.mxu0 %v757_v7  ;;  %399 = vmatpush1.bf16.msra.mxu1 %v758_v8  ;;  %v445_v17 = vrot.slane %v440_v14, %v444_v12  ;;  %v453_v18 = vrot.slane %v440_v14, %v452_v13  ;;  %v449_v19 = vrot.slane %v440_v14, %v448_v15  ;;  %s505_s11 = sshll.u32 %s272_s10, 4  ;;  %p1168_p13 = scmp.ne.s32.totalorder %s1161_s25, 0  ;;  %s506_s11 = int_to_ptr.vmem [resolvable:$true] %s505_s11 }
  0x58   : > { %v457_v20 = vrot.slane %v440_v14, %v456_v16  ;;  %s841_s30 = scalar_lea.vmem %s506_s11, 256  ;;  %s934_s27 = smov [#allocation9]  }
  0x59   : > { %p842_p8 = scmp.ne.s32.totalorder %s506_s11, %s841_s30  ;;  %s845_s1 = sshll.u32 %s934_s27, 4  ;;  %s846_s1 = int_to_ptr.vmem [resolvable:$false] %s845_s1 }
  0x5a   : > { %651 = vmatmul.mubr.msk.bf16.vlgmr.msra.gmra.mxu0 %vm339_vm0, %v290_v9  ;;  %652 = vmatmul.mubr.msk.bf16.vlgmr.msra.gmra.mxu1 %vm339_vm0, %v290_v9  ;;  %s847_s29 = scalar_lea.vmem %s846_s1, 512  ;;  %p848_p12 = scmp.lt.s32.totalorder %s506_s11, %s846_s1 }
  0x5b   : > { %p843_p0 = pnand %p842_p8, %p1168_p13  ;;  %p849_p7 = scmp.lt.s32.totalorder %s847_s29, %s841_s30 }
  0x5d   : > { %p844_p5 = pneg %p843_p0  ;;  %p850_p1 = por %p849_p7, %p848_p12 }
  0x5f   : > { %p851_p2 = pnand %p850_p1, %p844_p5 }
 0x11a   : > { %v377_v21 = vpop.f32.mrf.mxu0  ;;  %v418_v22 = vpop.f32.mrf.mxu1 }
 0x11b   : > { %v462_v23 = vadd.f32 %v445_v17, %v377_v21  ;;  %v464_v24 = vadd.f32 %v453_v18, %v418_v22 }
 0x11c   : > { %v379_v25 = vpop.f32.mrf.mxu0  ;;  %v420_v26 = vpop.f32.mrf.mxu1 }
 0x11d   : > { %v463_v27 = vadd.f32 %v449_v19, %v379_v25  ;;  %v465_v28 = vadd.f32 %v457_v20, %v420_v26  ;;  %v466_v31 = vmax.f32 %v462_v23, 0.0  ;;  %v468_v32 = vmax.f32 %v464_v24, 0.0 }
 0x11e   : > { %v381_v29 = vpop.f32.mrf.mxu0  ;;  %v422_v30 = vpop.f32.mrf.mxu1 }
 0x11f   : > { %v467_v33 = vmax.f32 %v463_v27, 0.0  ;;  %v469_v34 = vmax.f32 %v465_v28, 0.0 }
 0x120   : > { %v382_v35 = vpop.f32.mrf.mxu0  ;;  %v423_v36 = vpop.f32.mrf.mxu1 }
 0x121   : > { %v662_v37 = vpack.c.bf16 %v467_v33, %v466_v31  ;;  %v663_v38 = vpack.c.bf16 %v469_v34, %v468_v32 }
 0x123   : > { %486 = vst [vmem:[%s272_s10] sm:$0xff] %v662_v37  ;;  %487 = vst [vmem:[%s272_s10 + $0x8] sm:$0xff] %v663_v38 }
 0x124   : > { %854 = shalt.err (!%p851_p2)
}
 0x125   : > { %s855_s5 = scalar_lea.hbm %s1109_s21, 256  ;;  %s859_s8 = scalar_lea.hbm %s1153_s3, 2048 }
 0x126   : > { %p856_p4 = scmp.ne.s32.totalorder %s1109_s21, %s855_s5  ;;  %p860_p6 = scmp.lt.s32.totalorder %s1109_s21, %s1153_s3 }
 0x127   : > { %p861_p10 = scmp.lt.s32.totalorder %s859_s8, %s855_s5 }
 0x128   : > { %p857_p9 = pnand %p856_p4, %p1168_p13 }
 0x129   : > { %p862_p3 = por %p861_p10, %p860_p6 }
 0x12a   : > { %p858_p11 = pneg %p857_p9 }
 0x12c   : > { %p863_p8 = pnand %p862_p3, %p858_p11 }
 0x12e   : > { %866 = shalt.err (!%p863_p8)
}
 0x12f   : > { %673 = dma.vmem_to_hbm [thread:$0]  (%p1168_p13), %s506_s11, 256, %s1109_s21, %s489_s15  }
 0x130 PF: > { %p693_p0 = scmp.ge.s32.totalorder %s925_s17, 2  ;;  %s517_s23 = sand.u32 1, %s905_s12  }
 0x131   : > { %p1169_p5 = scmp.ne.s32.totalorder %s1162_s26, 0  ;;  %s518_s28 = scalar_lea.sflag [#allocation5], %s517_s23 }
 0x133   : > { %p687_p12 = pnand %p693_p0, %p1169_p5 }
 0x135   : > { %p688_p7 = pneg %p687_p12 }
 0x137   : > { %900 = dma.done.wait (%p688_p7), %s518_s28, 256  }
 0x138   : > { %902 = vsyncadd (%p688_p7), %s518_s28, 4294967040  ;;  %s20_s17 = sadd.s32 1, %s925_s17   ;;  %s1170_s12 = smov %s909_s13 }
 0x139   : > { %p17_p1 = scmp.ge.s32.totalorder %s20_s17, 10   ;;  %s1171_s13 = smov %s913_s14 }
 0x13a   : > { %s1172_s14 = smov %s1002_s24  ;;  %s1173_s15 = smov %s921_s16 }
 0x13b   : > { %s1174_s16 = smov %s1176_s18  ;;  %19 = sbr.rel (!%p17_p1) target bundleno = 9 (0x9), region = 102 }
 0x140   :  { %523 = vsyncpa [#allocation4], 1 }
 0x141   :  { %525 = vsyncpa [#allocation4 + $0x1], 1 }
 0x142   :  { %526 = vsyncpa [#allocation7], 1 }
 0x143   :  { %528 = vsyncpa [#allocation7 + $0x1], 1 }
 0x144   :  { %529 = vsyncpa [#allocation5], 1 }
 0x145   :  { %531 = vsyncpa [#allocation5 + $0x1], 1 }

</bundles_post_ra>
